<compile_context>
chip_gen: v5e
topology: v5e:2x2
jax: 0.10.0
libtpu: 0.0.40
codegen_flags: <defaults>
</compile_context>

<pallas_src>
import functools

import jax
import jax.numpy as jnp
from jax.experimental import pallas as pl
from jax.experimental.pallas import tpu as pltpu


def _fused_conv_shuffle_relu_kernel(x_ref, wp_ref, bp_ref, up_ref, perm_ref,
                                    o_ref):
    # x_ref    : (C_in, rows, W)         block of input image rows
    # wp_ref   : (C_out*r*C_in, 1, W*r)  weight lane-profiles, j = lane % r baked in
    # bp_ref   : (C_out*r, 1, W*r)       bias lane-profiles
    # up_ref   : (W, W*r)                0/1 lane-upsample matrix  [m // r == w]
    # perm_ref : (rows*r, rows*r)        0/1 row-interleave (permutation) matrix
    # o_ref    : (C_out, rows*r, W*r)    shuffled + ReLU'd output rows
    c_in, rows, W = x_ref.shape
    c_out, rows_r, W_r = o_ref.shape
    r = W_r // W

    # Lane upsample of every input channel (MXU, exact 0/1 gather):
    #   xup[cin][h, m] = x[cin, h, m // r]
    xup = [
        jnp.dot(x_ref[cin].astype(jnp.float32), up_ref[...],
                preferred_element_type=jnp.float32)
        for cin in range(c_in)
    ]

    for c in range(c_out):
        parts = []
        for i in range(r):
            # acc[h, m] = bias[k] + sum_cin weight[k, cin] * x[cin, h, m // r]
            # with k = c*r^2 + i*r + (m % r); the m%r dependence lives in wp/bp.
            acc = bp_ref[c * r + i]                                   # (1, W_r)
            for cin in range(c_in):
                acc = acc + xup[cin] * wp_ref[(c * r + i) * c_in + cin]
            parts.append(jnp.maximum(acc, 0.0))                       # fused ReLU
        u = jnp.concatenate(parts, axis=0)                            # (r*rows, W_r)
        # Row interleave: output row h' = h*r + i  <-  u row i*rows + h.
        # perm is a permutation matrix, so the matmul is an exact row gather.
        o_ref[c] = jnp.dot(perm_ref[...], u,
                           preferred_element_type=jnp.float32).astype(o_ref.dtype)


def _pick_rows(H, W, r, n_batch, target_lanes=2048):
    """Input rows per grid step.

    Must divide H and be a multiple of 8 (block rule), falling back to the full
    extent H.  Capped so the block stays around `target_lanes` input lanes, and
    shrunk (more grid steps) if needed so the parallel grid has >= 2 steps
    (feeds both v7x TensorCores; harmless on single-TC v5e/v6e).
    """
    cands = [d for d in range(8, H + 1, 8) if H % d == 0]
    if not cands:
        return H
    valid = [d for d in cands if d * W <= target_lanes] or [cands[0]]
    rows = valid[-1]
    while n_batch * (H // rows) < 2 and len(valid) > 1:
        valid = valid[:-1]
        rows = valid[-1]
    return rows


def pixel_shuffle_upsample(x_nchw, weight, bias, upscale_factor):
    """Forward pass matching the PyTorch module.

    x_nchw : (N, C_in, H, W)
    weight : (C_out * r^2, C_in, 1, 1)   (PyTorch Conv2d weight layout)
    bias   : (C_out * r^2,)
    returns: (N, C_out, H*r, W*r)
    """
    r = int(upscale_factor)
    N, C_in, H, W = x_nchw.shape
    K = weight.shape[0]
    C_out = K // (r * r)
    assert C_out * r * r == K
    W_r = W * r
    rows = _pick_rows(H, W, r, N)

    f32 = jnp.float32
    # ---- tiny parameter preprocessing (no HBM pass over x or the output) ----
    j_of_m = jnp.arange(W_r) % r                               # j = output lane % r
    w4 = weight.reshape(C_out, r, r, C_in).astype(f32)         # [c, i, j, cin]
    wp = jnp.transpose(w4[:, :, j_of_m, :], (0, 1, 3, 2))      # (C_out, r, C_in, W_r)
    wp = wp.reshape(C_out * r * C_in, 1, W_r)
    bp = bias.astype(f32).reshape(C_out, r, r)[:, :, j_of_m]   # (C_out, r, W_r)
    bp = bp.reshape(C_out * r, 1, W_r)
    # 0/1 lane-upsample matrix: up[w, m] = [m // r == w]
    up = (jnp.arange(W_r)[None, :] // r == jnp.arange(W)[:, None]).astype(f32)
    # 0/1 row-interleave matrix: perm[h', q] = [q == (h' % r) * rows + h' // r]
    hp = jnp.arange(rows * r)
    perm = (hp[None, :] == (hp[:, None] % r) * rows + hp[:, None] // r).astype(f32)

    out_shape = jax.ShapeDtypeStruct((N, C_out, H * r, W_r), x_nchw.dtype)
    flops = 2 * N * K * C_in * H * W
    bytes_accessed = (x_nchw.size * x_nchw.dtype.itemsize
                      + (wp.size + bp.size + up.size + perm.size) * 4
                      + N * C_out * (H * r) * W_r * out_shape.dtype.itemsize)

    return pl.pallas_call(
        _fused_conv_shuffle_relu_kernel,
        out_shape=out_shape,
        grid=(N, H // rows),
        in_specs=[
            pl.BlockSpec((None, C_in, rows, W), lambda n, t: (n, 0, t, 0)),
            pl.BlockSpec(wp.shape, lambda n, t: (0, 0, 0)),
            pl.BlockSpec(bp.shape, lambda n, t: (0, 0, 0)),
            pl.BlockSpec(up.shape, lambda n, t: (0, 0)),
            pl.BlockSpec(perm.shape, lambda n, t: (0, 0)),
        ],
        out_specs=pl.BlockSpec((None, C_out, rows * r, W_r),
                               lambda n, t: (n, 0, t, 0)),
        compiler_params=pltpu.CompilerParams(
            dimension_semantics=("parallel", "parallel")),
        cost_estimate=pl.CostEstimate(
            flops=int(flops), transcendentals=0,
            bytes_accessed=int(bytes_accessed)),
    )(x_nchw, wp, bp, up, perm)


def _reference(x_nchw, weight, bias, r):
    # Pure-JAX reference for validation (f32).
    N, C_in, H, W = x_nchw.shape
    K = weight.shape[0]
    C_out = K // (r * r)
    w2d = weight.reshape(K, C_in)
    y = jnp.einsum("nchw,kc->nkhw", x_nchw, w2d) + bias[None, :, None, None]
    y = y.reshape(N, C_out, r, r, H, W)
    y = jnp.transpose(y, (0, 1, 4, 2, 5, 3)).reshape(N, C_out, H * r, W * r)
    return jnp.maximum(y, 0.0)


if __name__ == "__main__":
    # Module config matching the PyTorch spec at small shapes.
    in_channels = 4
    out_channels = 4
    upscale_factor = 2
    K = out_channels * upscale_factor ** 2

    key = jax.random.PRNGKey(0)
    kx, kw, kb = jax.random.split(key, 3)

    x = jax.random.normal(kx, (2, in_channels, 16, 16), dtype=jnp.float32)

    fan_in = in_channels * 1 * 1
    bound = 1.0 / (fan_in ** 0.5)
    weight = jax.random.uniform(
        kw, (K, in_channels, 1, 1), minval=-bound, maxval=bound,
        dtype=jnp.float32)
    bias = jax.random.uniform(
        kb, (K,), minval=-bound, maxval=bound, dtype=jnp.float32)

    fwd = jax.jit(functools.partial(
        pixel_shuffle_upsample, upscale_factor=upscale_factor))
    out = jax.block_until_ready(fwd(x, weight, bias))

    ref = _reference(x, weight, bias, upscale_factor)
    assert out.shape == (2, out_channels, 32, 32), out.shape
    assert jnp.allclose(out, ref, atol=1e-5, rtol=1e-5)

    print("KERNEL_OK")
</pallas_src>

<mosaic_0001>
module attributes {stable_mosaic.version = 11 : i64} {
  func.func @_fused_conv_shuffle_relu_kernel(%arg0: i32, %arg1: i32, %arg2: memref<1x4x16x16xf32, #tpu.memory_space<vmem>>, %arg3: memref<32x1x32xf32, #tpu.memory_space<vmem>>, %arg4: memref<8x1x32xf32, #tpu.memory_space<vmem>>, %arg5: memref<16x32xf32, #tpu.memory_space<vmem>>, %arg6: memref<32x32xf32, #tpu.memory_space<vmem>>, %arg7: memref<1x4x32x32xf32, #tpu.memory_space<vmem>>) attributes {dimension_semantics = [#tpu.dimension_semantics<parallel>, #tpu.dimension_semantics<parallel>], iteration_bounds = array<i64: 2, 1>, scalar_prefetch = 0 : i64, scratch_operands = 0 : i64, tpu.core_type = #tpu.core_type<tc>, window_params = [{transform_indices = @transform_0, window_bounds = array<i64: 1, 4, 16, 16>}, {pipeline_mode = #tpu.pipeline_mode<synchronous>, transform_indices = @transform_1, window_bounds = array<i64: 32, 1, 32>}, {pipeline_mode = #tpu.pipeline_mode<synchronous>, transform_indices = @transform_2, window_bounds = array<i64: 8, 1, 32>}, {pipeline_mode = #tpu.pipeline_mode<synchronous>, transform_indices = @transform_3, window_bounds = array<i64: 16, 32>}, {pipeline_mode = #tpu.pipeline_mode<synchronous>, transform_indices = @transform_4, window_bounds = array<i64: 32, 32>}, {transform_indices = @transform_5, window_bounds = array<i64: 1, 4, 32, 32>}]} {
    %c0 = arith.constant 0 : index
    %c0_0 = arith.constant 0 : index
    %c0_1 = arith.constant 0 : index
    %c0_2 = arith.constant 0 : index
    %0 = vector.load %arg2[%c0, %c0_0, %c0_1, %c0_2] : memref<1x4x16x16xf32, #tpu.memory_space<vmem>>, vector<1x1x16x16xf32>
    %1 = vector.shape_cast %0 : vector<1x1x16x16xf32> to vector<16x16xf32>
    %c0_3 = arith.constant 0 : index
    %c0_4 = arith.constant 0 : index
    %2 = vector.load %arg5[%c0_3, %c0_4] : memref<16x32xf32, #tpu.memory_space<vmem>>, vector<16x32xf32>
    %cst = arith.constant dense<0.000000e+00> : vector<16x32xf32>
    %3 = tpu.matmul %1, %2, %cst {dimension_numbers = #tpu.dot_dimension_numbers<[1], [0], [0], [1], [0, 0, 1, 1], [], []>} : vector<16x16xf32>, vector<16x32xf32>, vector<16x32xf32> -> vector<16x32xf32>
    %c0_5 = arith.constant 0 : index
    %c1 = arith.constant 1 : index
    %c0_6 = arith.constant 0 : index
    %c0_7 = arith.constant 0 : index
    %4 = vector.load %arg2[%c0_5, %c1, %c0_6, %c0_7] : memref<1x4x16x16xf32, #tpu.memory_space<vmem>>, vector<1x1x16x16xf32>
    %5 = vector.shape_cast %4 : vector<1x1x16x16xf32> to vector<16x16xf32>
    %c0_8 = arith.constant 0 : index
    %c0_9 = arith.constant 0 : index
    %6 = vector.load %arg5[%c0_8, %c0_9] : memref<16x32xf32, #tpu.memory_space<vmem>>, vector<16x32xf32>
    %cst_10 = arith.constant dense<0.000000e+00> : vector<16x32xf32>
    %7 = tpu.matmul %5, %6, %cst_10 {dimension_numbers = #tpu.dot_dimension_numbers<[1], [0], [0], [1], [0, 0, 1, 1], [], []>} : vector<16x16xf32>, vector<16x32xf32>, vector<16x32xf32> -> vector<16x32xf32>
    %c0_11 = arith.constant 0 : index
    %c2 = arith.constant 2 : index
    %c0_12 = arith.constant 0 : index
    %c0_13 = arith.constant 0 : index
    %8 = vector.load %arg2[%c0_11, %c2, %c0_12, %c0_13] : memref<1x4x16x16xf32, #tpu.memory_space<vmem>>, vector<1x1x16x16xf32>
    %9 = vector.shape_cast %8 : vector<1x1x16x16xf32> to vector<16x16xf32>
    %c0_14 = arith.constant 0 : index
    %c0_15 = arith.constant 0 : index
    %10 = vector.load %arg5[%c0_14, %c0_15] : memref<16x32xf32, #tpu.memory_space<vmem>>, vector<16x32xf32>
    %cst_16 = arith.constant dense<0.000000e+00> : vector<16x32xf32>
    %11 = tpu.matmul %9, %10, %cst_16 {dimension_numbers = #tpu.dot_dimension_numbers<[1], [0], [0], [1], [0, 0, 1, 1], [], []>} : vector<16x16xf32>, vector<16x32xf32>, vector<16x32xf32> -> vector<16x32xf32>
    %c0_17 = arith.constant 0 : index
    %c3 = arith.constant 3 : index
    %c0_18 = arith.constant 0 : index
    %c0_19 = arith.constant 0 : index
    %12 = vector.load %arg2[%c0_17, %c3, %c0_18, %c0_19] : memref<1x4x16x16xf32, #tpu.memory_space<vmem>>, vector<1x1x16x16xf32>
    %13 = vector.shape_cast %12 : vector<1x1x16x16xf32> to vector<16x16xf32>
    %c0_20 = arith.constant 0 : index
    %c0_21 = arith.constant 0 : index
    %14 = vector.load %arg5[%c0_20, %c0_21] : memref<16x32xf32, #tpu.memory_space<vmem>>, vector<16x32xf32>
    %cst_22 = arith.constant dense<0.000000e+00> : vector<16x32xf32>
    %15 = tpu.matmul %13, %14, %cst_22 {dimension_numbers = #tpu.dot_dimension_numbers<[1], [0], [0], [1], [0, 0, 1, 1], [], []>} : vector<16x16xf32>, vector<16x32xf32>, vector<16x32xf32> -> vector<16x32xf32>
    %c0_23 = arith.constant 0 : index
    %c0_24 = arith.constant 0 : index
    %c0_25 = arith.constant 0 : index
    %16 = vector.load %arg4[%c0_23, %c0_24, %c0_25] : memref<8x1x32xf32, #tpu.memory_space<vmem>>, vector<1x1x32xf32>
    %17 = vector.shape_cast %16 : vector<1x1x32xf32> to vector<1x32xf32>
    %c0_26 = arith.constant 0 : index
    %c0_27 = arith.constant 0 : index
    %c0_28 = arith.constant 0 : index
    %18 = vector.load %arg3[%c0_26, %c0_27, %c0_28] : memref<32x1x32xf32, #tpu.memory_space<vmem>>, vector<1x1x32xf32>
    %19 = vector.shape_cast %18 : vector<1x1x32xf32> to vector<1x32xf32>
    %20 = vector.broadcast %19 : vector<1x32xf32> to vector<16x32xf32>
    %21 = arith.mulf %3, %20 : vector<16x32xf32>
    %22 = vector.broadcast %17 : vector<1x32xf32> to vector<16x32xf32>
    %23 = arith.addf %22, %21 : vector<16x32xf32>
    %c1_29 = arith.constant 1 : index
    %c0_30 = arith.constant 0 : index
    %c0_31 = arith.constant 0 : index
    %24 = vector.load %arg3[%c1_29, %c0_30, %c0_31] : memref<32x1x32xf32, #tpu.memory_space<vmem>>, vector<1x1x32xf32>
    %25 = vector.shape_cast %24 : vector<1x1x32xf32> to vector<1x32xf32>
    %26 = vector.broadcast %25 : vector<1x32xf32> to vector<16x32xf32>
    %27 = arith.mulf %7, %26 : vector<16x32xf32>
    %28 = arith.addf %23, %27 : vector<16x32xf32>
    %c2_32 = arith.constant 2 : index
    %c0_33 = arith.constant 0 : index
    %c0_34 = arith.constant 0 : index
    %29 = vector.load %arg3[%c2_32, %c0_33, %c0_34] : memref<32x1x32xf32, #tpu.memory_space<vmem>>, vector<1x1x32xf32>
    %30 = vector.shape_cast %29 : vector<1x1x32xf32> to vector<1x32xf32>
    %31 = vector.broadcast %30 : vector<1x32xf32> to vector<16x32xf32>
    %32 = arith.mulf %11, %31 : vector<16x32xf32>
    %33 = arith.addf %28, %32 : vector<16x32xf32>
    %c3_35 = arith.constant 3 : index
    %c0_36 = arith.constant 0 : index
    %c0_37 = arith.constant 0 : index
    %34 = vector.load %arg3[%c3_35, %c0_36, %c0_37] : memref<32x1x32xf32, #tpu.memory_space<vmem>>, vector<1x1x32xf32>
    %35 = vector.shape_cast %34 : vector<1x1x32xf32> to vector<1x32xf32>
    %36 = vector.broadcast %35 : vector<1x32xf32> to vector<16x32xf32>
    %37 = arith.mulf %15, %36 : vector<16x32xf32>
    %38 = arith.addf %33, %37 : vector<16x32xf32>
    %cst_38 = arith.constant 0.000000e+00 : f32
    %39 = vector.broadcast %cst_38 : f32 to vector<16x32xf32>
    %40 = arith.maximumf %38, %39 : vector<16x32xf32>
    %c1_39 = arith.constant 1 : index
    %c0_40 = arith.constant 0 : index
    %c0_41 = arith.constant 0 : index
    %41 = vector.load %arg4[%c1_39, %c0_40, %c0_41] : memref<8x1x32xf32, #tpu.memory_space<vmem>>, vector<1x1x32xf32>
    %42 = vector.shape_cast %41 : vector<1x1x32xf32> to vector<1x32xf32>
    %c4 = arith.constant 4 : index
    %c0_42 = arith.constant 0 : index
    %c0_43 = arith.constant 0 : index
    %43 = vector.load %arg3[%c4, %c0_42, %c0_43] : memref<32x1x32xf32, #tpu.memory_space<vmem>>, vector<1x1x32xf32>
    %44 = vector.shape_cast %43 : vector<1x1x32xf32> to vector<1x32xf32>
    %45 = vector.broadcast %44 : vector<1x32xf32> to vector<16x32xf32>
    %46 = arith.mulf %3, %45 : vector<16x32xf32>
    %47 = vector.broadcast %42 : vector<1x32xf32> to vector<16x32xf32>
    %48 = arith.addf %47, %46 : vector<16x32xf32>
    %c5 = arith.constant 5 : index
    %c0_44 = arith.constant 0 : index
    %c0_45 = arith.constant 0 : index
    %49 = vector.load %arg3[%c5, %c0_44, %c0_45] : memref<32x1x32xf32, #tpu.memory_space<vmem>>, vector<1x1x32xf32>
    %50 = vector.shape_cast %49 : vector<1x1x32xf32> to vector<1x32xf32>
    %51 = vector.broadcast %50 : vector<1x32xf32> to vector<16x32xf32>
    %52 = arith.mulf %7, %51 : vector<16x32xf32>
    %53 = arith.addf %48, %52 : vector<16x32xf32>
    %c6 = arith.constant 6 : index
    %c0_46 = arith.constant 0 : index
    %c0_47 = arith.constant 0 : index
    %54 = vector.load %arg3[%c6, %c0_46, %c0_47] : memref<32x1x32xf32, #tpu.memory_space<vmem>>, vector<1x1x32xf32>
    %55 = vector.shape_cast %54 : vector<1x1x32xf32> to vector<1x32xf32>
    %56 = vector.broadcast %55 : vector<1x32xf32> to vector<16x32xf32>
    %57 = arith.mulf %11, %56 : vector<16x32xf32>
    %58 = arith.addf %53, %57 : vector<16x32xf32>
    %c7 = arith.constant 7 : index
    %c0_48 = arith.constant 0 : index
    %c0_49 = arith.constant 0 : index
    %59 = vector.load %arg3[%c7, %c0_48, %c0_49] : memref<32x1x32xf32, #tpu.memory_space<vmem>>, vector<1x1x32xf32>
    %60 = vector.shape_cast %59 : vector<1x1x32xf32> to vector<1x32xf32>
    %61 = vector.broadcast %60 : vector<1x32xf32> to vector<16x32xf32>
    %62 = arith.mulf %15, %61 : vector<16x32xf32>
    %63 = arith.addf %58, %62 : vector<16x32xf32>
    %cst_50 = arith.constant 0.000000e+00 : f32
    %64 = vector.broadcast %cst_50 : f32 to vector<16x32xf32>
    %65 = arith.maximumf %63, %64 : vector<16x32xf32>
    %66 = tpu.concatenate %40, %65 in 0 : vector<16x32xf32>, vector<16x32xf32> -> vector<32x32xf32>
    %c0_51 = arith.constant 0 : index
    %c0_52 = arith.constant 0 : index
    %67 = vector.load %arg6[%c0_51, %c0_52] : memref<32x32xf32, #tpu.memory_space<vmem>>, vector<32x32xf32>
    %cst_53 = arith.constant dense<0.000000e+00> : vector<32x32xf32>
    %68 = tpu.matmul %67, %66, %cst_53 {dimension_numbers = #tpu.dot_dimension_numbers<[1], [0], [0], [1], [0, 0, 1, 1], [], []>} : vector<32x32xf32>, vector<32x32xf32>, vector<32x32xf32> -> vector<32x32xf32>
    %c0_54 = arith.constant 0 : index
    %c0_55 = arith.constant 0 : index
    %c0_56 = arith.constant 0 : index
    %c0_57 = arith.constant 0 : index
    %69 = vector.load %arg7[%c0_54, %c0_55, %c0_56, %c0_57] : memref<1x4x32x32xf32, #tpu.memory_space<vmem>>, vector<1x1x32x32xf32>
    %70 = vector.shape_cast %69 : vector<1x1x32x32xf32> to vector<32x32xf32>
    %71 = vector.shape_cast %68 : vector<32x32xf32> to vector<1x1x32x32xf32>
    tpu.vector_store %arg7[%c0_54, %c0_55, %c0_56, %c0_57], %71 {strides = array<i32>} : memref<1x4x32x32xf32, #tpu.memory_space<vmem>>, vector<1x1x32x32xf32>,
    %c2_58 = arith.constant 2 : index
    %c0_59 = arith.constant 0 : index
    %c0_60 = arith.constant 0 : index
    %72 = vector.load %arg4[%c2_58, %c0_59, %c0_60] : memref<8x1x32xf32, #tpu.memory_space<vmem>>, vector<1x1x32xf32>
    %73 = vector.shape_cast %72 : vector<1x1x32xf32> to vector<1x32xf32>
    %c8 = arith.constant 8 : index
    %c0_61 = arith.constant 0 : index
    %c0_62 = arith.constant 0 : index
    %74 = vector.load %arg3[%c8, %c0_61, %c0_62] : memref<32x1x32xf32, #tpu.memory_space<vmem>>, vector<1x1x32xf32>
    %75 = vector.shape_cast %74 : vector<1x1x32xf32> to vector<1x32xf32>
    %76 = vector.broadcast %75 : vector<1x32xf32> to vector<16x32xf32>
    %77 = arith.mulf %3, %76 : vector<16x32xf32>
    %78 = vector.broadcast %73 : vector<1x32xf32> to vector<16x32xf32>
    %79 = arith.addf %78, %77 : vector<16x32xf32>
    %c9 = arith.constant 9 : index
    %c0_63 = arith.constant 0 : index
    %c0_64 = arith.constant 0 : index
    %80 = vector.load %arg3[%c9, %c0_63, %c0_64] : memref<32x1x32xf32, #tpu.memory_space<vmem>>, vector<1x1x32xf32>
    %81 = vector.shape_cast %80 : vector<1x1x32xf32> to vector<1x32xf32>
    %82 = vector.broadcast %81 : vector<1x32xf32> to vector<16x32xf32>
    %83 = arith.mulf %7, %82 : vector<16x32xf32>
    %84 = arith.addf %79, %83 : vector<16x32xf32>
    %c10 = arith.constant 10 : index
    %c0_65 = arith.constant 0 : index
    %c0_66 = arith.constant 0 : index
    %85 = vector.load %arg3[%c10, %c0_65, %c0_66] : memref<32x1x32xf32, #tpu.memory_space<vmem>>, vector<1x1x32xf32>
    %86 = vector.shape_cast %85 : vector<1x1x32xf32> to vector<1x32xf32>
    %87 = vector.broadcast %86 : vector<1x32xf32> to vector<16x32xf32>
    %88 = arith.mulf %11, %87 : vector<16x32xf32>
    %89 = arith.addf %84, %88 : vector<16x32xf32>
    %c11 = arith.constant 11 : index
    %c0_67 = arith.constant 0 : index
    %c0_68 = arith.constant 0 : index
    %90 = vector.load %arg3[%c11, %c0_67, %c0_68] : memref<32x1x32xf32, #tpu.memory_space<vmem>>, vector<1x1x32xf32>
    %91 = vector.shape_cast %90 : vector<1x1x32xf32> to vector<1x32xf32>
    %92 = vector.broadcast %91 : vector<1x32xf32> to vector<16x32xf32>
    %93 = arith.mulf %15, %92 : vector<16x32xf32>
    %94 = arith.addf %89, %93 : vector<16x32xf32>
    %cst_69 = arith.constant 0.000000e+00 : f32
    %95 = vector.broadcast %cst_69 : f32 to vector<16x32xf32>
    %96 = arith.maximumf %94, %95 : vector<16x32xf32>
    %c3_70 = arith.constant 3 : index
    %c0_71 = arith.constant 0 : index
    %c0_72 = arith.constant 0 : index
    %97 = vector.load %arg4[%c3_70, %c0_71, %c0_72] : memref<8x1x32xf32, #tpu.memory_space<vmem>>, vector<1x1x32xf32>
    %98 = vector.shape_cast %97 : vector<1x1x32xf32> to vector<1x32xf32>
    %c12 = arith.constant 12 : index
    %c0_73 = arith.constant 0 : index
    %c0_74 = arith.constant 0 : index
    %99 = vector.load %arg3[%c12, %c0_73, %c0_74] : memref<32x1x32xf32, #tpu.memory_space<vmem>>, vector<1x1x32xf32>
    %100 = vector.shape_cast %99 : vector<1x1x32xf32> to vector<1x32xf32>
    %101 = vector.broadcast %100 : vector<1x32xf32> to vector<16x32xf32>
    %102 = arith.mulf %3, %101 : vector<16x32xf32>
    %103 = vector.broadcast %98 : vector<1x32xf32> to vector<16x32xf32>
    %104 = arith.addf %103, %102 : vector<16x32xf32>
    %c13 = arith.constant 13 : index
    %c0_75 = arith.constant 0 : index
    %c0_76 = arith.constant 0 : index
    %105 = vector.load %arg3[%c13, %c0_75, %c0_76] : memref<32x1x32xf32, #tpu.memory_space<vmem>>, vector<1x1x32xf32>
    %106 = vector.shape_cast %105 : vector<1x1x32xf32> to vector<1x32xf32>
    %107 = vector.broadcast %106 : vector<1x32xf32> to vector<16x32xf32>
    %108 = arith.mulf %7, %107 : vector<16x32xf32>
    %109 = arith.addf %104, %108 : vector<16x32xf32>
    %c14 = arith.constant 14 : index
    %c0_77 = arith.constant 0 : index
    %c0_78 = arith.constant 0 : index
    %110 = vector.load %arg3[%c14, %c0_77, %c0_78] : memref<32x1x32xf32, #tpu.memory_space<vmem>>, vector<1x1x32xf32>
    %111 = vector.shape_cast %110 : vector<1x1x32xf32> to vector<1x32xf32>
    %112 = vector.broadcast %111 : vector<1x32xf32> to vector<16x32xf32>
    %113 = arith.mulf %11, %112 : vector<16x32xf32>
    %114 = arith.addf %109, %113 : vector<16x32xf32>
    %c15 = arith.constant 15 : index
    %c0_79 = arith.constant 0 : index
    %c0_80 = arith.constant 0 : index
    %115 = vector.load %arg3[%c15, %c0_79, %c0_80] : memref<32x1x32xf32, #tpu.memory_space<vmem>>, vector<1x1x32xf32>
    %116 = vector.shape_cast %115 : vector<1x1x32xf32> to vector<1x32xf32>
    %117 = vector.broadcast %116 : vector<1x32xf32> to vector<16x32xf32>
    %118 = arith.mulf %15, %117 : vector<16x32xf32>
    %119 = arith.addf %114, %118 : vector<16x32xf32>
    %cst_81 = arith.constant 0.000000e+00 : f32
    %120 = vector.broadcast %cst_81 : f32 to vector<16x32xf32>
    %121 = arith.maximumf %119, %120 : vector<16x32xf32>
    %122 = tpu.concatenate %96, %121 in 0 : vector<16x32xf32>, vector<16x32xf32> -> vector<32x32xf32>
    %c0_82 = arith.constant 0 : index
    %c0_83 = arith.constant 0 : index
    %123 = vector.load %arg6[%c0_82, %c0_83] : memref<32x32xf32, #tpu.memory_space<vmem>>, vector<32x32xf32>
    %cst_84 = arith.constant dense<0.000000e+00> : vector<32x32xf32>
    %124 = tpu.matmul %123, %122, %cst_84 {dimension_numbers = #tpu.dot_dimension_numbers<[1], [0], [0], [1], [0, 0, 1, 1], [], []>} : vector<32x32xf32>, vector<32x32xf32>, vector<32x32xf32> -> vector<32x32xf32>
    %c0_85 = arith.constant 0 : index
    %c1_86 = arith.constant 1 : index
    %c0_87 = arith.constant 0 : index
    %c0_88 = arith.constant 0 : index
    %125 = vector.load %arg7[%c0_85, %c1_86, %c0_87, %c0_88] : memref<1x4x32x32xf32, #tpu.memory_space<vmem>>, vector<1x1x32x32xf32>
    %126 = vector.shape_cast %125 : vector<1x1x32x32xf32> to vector<32x32xf32>
    %127 = vector.shape_cast %124 : vector<32x32xf32> to vector<1x1x32x32xf32>
    tpu.vector_store %arg7[%c0_85, %c1_86, %c0_87, %c0_88], %127 {strides = array<i32>} : memref<1x4x32x32xf32, #tpu.memory_space<vmem>>, vector<1x1x32x32xf32>,
    %c4_89 = arith.constant 4 : index
    %c0_90 = arith.constant 0 : index
    %c0_91 = arith.constant 0 : index
    %128 = vector.load %arg4[%c4_89, %c0_90, %c0_91] : memref<8x1x32xf32, #tpu.memory_space<vmem>>, vector<1x1x32xf32>
    %129 = vector.shape_cast %128 : vector<1x1x32xf32> to vector<1x32xf32>
    %c16 = arith.constant 16 : index
    %c0_92 = arith.constant 0 : index
    %c0_93 = arith.constant 0 : index
    %130 = vector.load %arg3[%c16, %c0_92, %c0_93] : memref<32x1x32xf32, #tpu.memory_space<vmem>>, vector<1x1x32xf32>
    %131 = vector.shape_cast %130 : vector<1x1x32xf32> to vector<1x32xf32>
    %132 = vector.broadcast %131 : vector<1x32xf32> to vector<16x32xf32>
    %133 = arith.mulf %3, %132 : vector<16x32xf32>
    %134 = vector.broadcast %129 : vector<1x32xf32> to vector<16x32xf32>
    %135 = arith.addf %134, %133 : vector<16x32xf32>
    %c17 = arith.constant 17 : index
    %c0_94 = arith.constant 0 : index
    %c0_95 = arith.constant 0 : index
    %136 = vector.load %arg3[%c17, %c0_94, %c0_95] : memref<32x1x32xf32, #tpu.memory_space<vmem>>, vector<1x1x32xf32>
    %137 = vector.shape_cast %136 : vector<1x1x32xf32> to vector<1x32xf32>
    %138 = vector.broadcast %137 : vector<1x32xf32> to vector<16x32xf32>
    %139 = arith.mulf %7, %138 : vector<16x32xf32>
    %140 = arith.addf %135, %139 : vector<16x32xf32>
    %c18 = arith.constant 18 : index
    %c0_96 = arith.constant 0 : index
    %c0_97 = arith.constant 0 : index
    %141 = vector.load %arg3[%c18, %c0_96, %c0_97] : memref<32x1x32xf32, #tpu.memory_space<vmem>>, vector<1x1x32xf32>
    %142 = vector.shape_cast %141 : vector<1x1x32xf32> to vector<1x32xf32>
    %143 = vector.broadcast %142 : vector<1x32xf32> to vector<16x32xf32>
    %144 = arith.mulf %11, %143 : vector<16x32xf32>
    %145 = arith.addf %140, %144 : vector<16x32xf32>
    %c19 = arith.constant 19 : index
    %c0_98 = arith.constant 0 : index
    %c0_99 = arith.constant 0 : index
    %146 = vector.load %arg3[%c19, %c0_98, %c0_99] : memref<32x1x32xf32, #tpu.memory_space<vmem>>, vector<1x1x32xf32>
    %147 = vector.shape_cast %146 : vector<1x1x32xf32> to vector<1x32xf32>
    %148 = vector.broadcast %147 : vector<1x32xf32> to vector<16x32xf32>
    %149 = arith.mulf %15, %148 : vector<16x32xf32>
    %150 = arith.addf %145, %149 : vector<16x32xf32>
    %cst_100 = arith.constant 0.000000e+00 : f32
    %151 = vector.broadcast %cst_100 : f32 to vector<16x32xf32>
    %152 = arith.maximumf %150, %151 : vector<16x32xf32>
    %c5_101 = arith.constant 5 : index
    %c0_102 = arith.constant 0 : index
    %c0_103 = arith.constant 0 : index
    %153 = vector.load %arg4[%c5_101, %c0_102, %c0_103] : memref<8x1x32xf32, #tpu.memory_space<vmem>>, vector<1x1x32xf32>
    %154 = vector.shape_cast %153 : vector<1x1x32xf32> to vector<1x32xf32>
    %c20 = arith.constant 20 : index
    %c0_104 = arith.constant 0 : index
    %c0_105 = arith.constant 0 : index
    %155 = vector.load %arg3[%c20, %c0_104, %c0_105] : memref<32x1x32xf32, #tpu.memory_space<vmem>>, vector<1x1x32xf32>
    %156 = vector.shape_cast %155 : vector<1x1x32xf32> to vector<1x32xf32>
    %157 = vector.broadcast %156 : vector<1x32xf32> to vector<16x32xf32>
    %158 = arith.mulf %3, %157 : vector<16x32xf32>
    %159 = vector.broadcast %154 : vector<1x32xf32> to vector<16x32xf32>
    %160 = arith.addf %159, %158 : vector<16x32xf32>
    %c21 = arith.constant 21 : index
    %c0_106 = arith.constant 0 : index
    %c0_107 = arith.constant 0 : index
    %161 = vector.load %arg3[%c21, %c0_106, %c0_107] : memref<32x1x32xf32, #tpu.memory_space<vmem>>, vector<1x1x32xf32>
    %162 = vector.shape_cast %161 : vector<1x1x32xf32> to vector<1x32xf32>
    %163 = vector.broadcast %162 : vector<1x32xf32> to vector<16x32xf32>
    %164 = arith.mulf %7, %163 : vector<16x32xf32>
    %165 = arith.addf %160, %164 : vector<16x32xf32>
    %c22 = arith.constant 22 : index
    %c0_108 = arith.constant 0 : index
    %c0_109 = arith.constant 0 : index
    %166 = vector.load %arg3[%c22, %c0_108, %c0_109] : memref<32x1x32xf32, #tpu.memory_space<vmem>>, vector<1x1x32xf32>
    %167 = vector.shape_cast %166 : vector<1x1x32xf32> to vector<1x32xf32>
    %168 = vector.broadcast %167 : vector<1x32xf32> to vector<16x32xf32>
    %169 = arith.mulf %11, %168 : vector<16x32xf32>
    %170 = arith.addf %165, %169 : vector<16x32xf32>
    %c23 = arith.constant 23 : index
    %c0_110 = arith.constant 0 : index
    %c0_111 = arith.constant 0 : index
    %171 = vector.load %arg3[%c23, %c0_110, %c0_111] : memref<32x1x32xf32, #tpu.memory_space<vmem>>, vector<1x1x32xf32>
    %172 = vector.shape_cast %171 : vector<1x1x32xf32> to vector<1x32xf32>
    %173 = vector.broadcast %172 : vector<1x32xf32> to vector<16x32xf32>
    %174 = arith.mulf %15, %173 : vector<16x32xf32>
    %175 = arith.addf %170, %174 : vector<16x32xf32>
    %cst_112 = arith.constant 0.000000e+00 : f32
    %176 = vector.broadcast %cst_112 : f32 to vector<16x32xf32>
    %177 = arith.maximumf %175, %176 : vector<16x32xf32>
    %178 = tpu.concatenate %152, %177 in 0 : vector<16x32xf32>, vector<16x32xf32> -> vector<32x32xf32>
    %c0_113 = arith.constant 0 : index
    %c0_114 = arith.constant 0 : index
    %179 = vector.load %arg6[%c0_113, %c0_114] : memref<32x32xf32, #tpu.memory_space<vmem>>, vector<32x32xf32>
    %cst_115 = arith.constant dense<0.000000e+00> : vector<32x32xf32>
    %180 = tpu.matmul %179, %178, %cst_115 {dimension_numbers = #tpu.dot_dimension_numbers<[1], [0], [0], [1], [0, 0, 1, 1], [], []>} : vector<32x32xf32>, vector<32x32xf32>, vector<32x32xf32> -> vector<32x32xf32>
    %c0_116 = arith.constant 0 : index
    %c2_117 = arith.constant 2 : index
    %c0_118 = arith.constant 0 : index
    %c0_119 = arith.constant 0 : index
    %181 = vector.load %arg7[%c0_116, %c2_117, %c0_118, %c0_119] : memref<1x4x32x32xf32, #tpu.memory_space<vmem>>, vector<1x1x32x32xf32>
    %182 = vector.shape_cast %181 : vector<1x1x32x32xf32> to vector<32x32xf32>
    %183 = vector.shape_cast %180 : vector<32x32xf32> to vector<1x1x32x32xf32>
    tpu.vector_store %arg7[%c0_116, %c2_117, %c0_118, %c0_119], %183 {strides = array<i32>} : memref<1x4x32x32xf32, #tpu.memory_space<vmem>>, vector<1x1x32x32xf32>,
    %c6_120 = arith.constant 6 : index
    %c0_121 = arith.constant 0 : index
    %c0_122 = arith.constant 0 : index
    %184 = vector.load %arg4[%c6_120, %c0_121, %c0_122] : memref<8x1x32xf32, #tpu.memory_space<vmem>>, vector<1x1x32xf32>
    %185 = vector.shape_cast %184 : vector<1x1x32xf32> to vector<1x32xf32>
    %c24 = arith.constant 24 : index
    %c0_123 = arith.constant 0 : index
    %c0_124 = arith.constant 0 : index
    %186 = vector.load %arg3[%c24, %c0_123, %c0_124] : memref<32x1x32xf32, #tpu.memory_space<vmem>>, vector<1x1x32xf32>
    %187 = vector.shape_cast %186 : vector<1x1x32xf32> to vector<1x32xf32>
    %188 = vector.broadcast %187 : vector<1x32xf32> to vector<16x32xf32>
    %189 = arith.mulf %3, %188 : vector<16x32xf32>
    %190 = vector.broadcast %185 : vector<1x32xf32> to vector<16x32xf32>
    %191 = arith.addf %190, %189 : vector<16x32xf32>
    %c25 = arith.constant 25 : index
    %c0_125 = arith.constant 0 : index
    %c0_126 = arith.constant 0 : index
    %192 = vector.load %arg3[%c25, %c0_125, %c0_126] : memref<32x1x32xf32, #tpu.memory_space<vmem>>, vector<1x1x32xf32>
    %193 = vector.shape_cast %192 : vector<1x1x32xf32> to vector<1x32xf32>
    %194 = vector.broadcast %193 : vector<1x32xf32> to vector<16x32xf32>
    %195 = arith.mulf %7, %194 : vector<16x32xf32>
    %196 = arith.addf %191, %195 : vector<16x32xf32>
    %c26 = arith.constant 26 : index
    %c0_127 = arith.constant 0 : index
    %c0_128 = arith.constant 0 : index
    %197 = vector.load %arg3[%c26, %c0_127, %c0_128] : memref<32x1x32xf32, #tpu.memory_space<vmem>>, vector<1x1x32xf32>
    %198 = vector.shape_cast %197 : vector<1x1x32xf32> to vector<1x32xf32>
    %199 = vector.broadcast %198 : vector<1x32xf32> to vector<16x32xf32>
    %200 = arith.mulf %11, %199 : vector<16x32xf32>
    %201 = arith.addf %196, %200 : vector<16x32xf32>
    %c27 = arith.constant 27 : index
    %c0_129 = arith.constant 0 : index
    %c0_130 = arith.constant 0 : index
    %202 = vector.load %arg3[%c27, %c0_129, %c0_130] : memref<32x1x32xf32, #tpu.memory_space<vmem>>, vector<1x1x32xf32>
    %203 = vector.shape_cast %202 : vector<1x1x32xf32> to vector<1x32xf32>
    %204 = vector.broadcast %203 : vector<1x32xf32> to vector<16x32xf32>
    %205 = arith.mulf %15, %204 : vector<16x32xf32>
    %206 = arith.addf %201, %205 : vector<16x32xf32>
    %cst_131 = arith.constant 0.000000e+00 : f32
    %207 = vector.broadcast %cst_131 : f32 to vector<16x32xf32>
    %208 = arith.maximumf %206, %207 : vector<16x32xf32>
    %c7_132 = arith.constant 7 : index
    %c0_133 = arith.constant 0 : index
    %c0_134 = arith.constant 0 : index
    %209 = vector.load %arg4[%c7_132, %c0_133, %c0_134] : memref<8x1x32xf32, #tpu.memory_space<vmem>>, vector<1x1x32xf32>
    %210 = vector.shape_cast %209 : vector<1x1x32xf32> to vector<1x32xf32>
    %c28 = arith.constant 28 : index
    %c0_135 = arith.constant 0 : index
    %c0_136 = arith.constant 0 : index
    %211 = vector.load %arg3[%c28, %c0_135, %c0_136] : memref<32x1x32xf32, #tpu.memory_space<vmem>>, vector<1x1x32xf32>
    %212 = vector.shape_cast %211 : vector<1x1x32xf32> to vector<1x32xf32>
    %213 = vector.broadcast %212 : vector<1x32xf32> to vector<16x32xf32>
    %214 = arith.mulf %3, %213 : vector<16x32xf32>
    %215 = vector.broadcast %210 : vector<1x32xf32> to vector<16x32xf32>
    %216 = arith.addf %215, %214 : vector<16x32xf32>
    %c29 = arith.constant 29 : index
    %c0_137 = arith.constant 0 : index
    %c0_138 = arith.constant 0 : index
    %217 = vector.load %arg3[%c29, %c0_137, %c0_138] : memref<32x1x32xf32, #tpu.memory_space<vmem>>, vector<1x1x32xf32>
    %218 = vector.shape_cast %217 : vector<1x1x32xf32> to vector<1x32xf32>
    %219 = vector.broadcast %218 : vector<1x32xf32> to vector<16x32xf32>
    %220 = arith.mulf %7, %219 : vector<16x32xf32>
    %221 = arith.addf %216, %220 : vector<16x32xf32>
    %c30 = arith.constant 30 : index
    %c0_139 = arith.constant 0 : index
    %c0_140 = arith.constant 0 : index
    %222 = vector.load %arg3[%c30, %c0_139, %c0_140] : memref<32x1x32xf32, #tpu.memory_space<vmem>>, vector<1x1x32xf32>
    %223 = vector.shape_cast %222 : vector<1x1x32xf32> to vector<1x32xf32>
    %224 = vector.broadcast %223 : vector<1x32xf32> to vector<16x32xf32>
    %225 = arith.mulf %11, %224 : vector<16x32xf32>
    %226 = arith.addf %221, %225 : vector<16x32xf32>
    %c31 = arith.constant 31 : index
    %c0_141 = arith.constant 0 : index
    %c0_142 = arith.constant 0 : index
    %227 = vector.load %arg3[%c31, %c0_141, %c0_142] : memref<32x1x32xf32, #tpu.memory_space<vmem>>, vector<1x1x32xf32>
    %228 = vector.shape_cast %227 : vector<1x1x32xf32> to vector<1x32xf32>
    %229 = vector.broadcast %228 : vector<1x32xf32> to vector<16x32xf32>
    %230 = arith.mulf %15, %229 : vector<16x32xf32>
    %231 = arith.addf %226, %230 : vector<16x32xf32>
    %cst_143 = arith.constant 0.000000e+00 : f32
    %232 = vector.broadcast %cst_143 : f32 to vector<16x32xf32>
    %233 = arith.maximumf %231, %232 : vector<16x32xf32>
    %234 = tpu.concatenate %208, %233 in 0 : vector<16x32xf32>, vector<16x32xf32> -> vector<32x32xf32>
    %c0_144 = arith.constant 0 : index
    %c0_145 = arith.constant 0 : index
    %235 = vector.load %arg6[%c0_144, %c0_145] : memref<32x32xf32, #tpu.memory_space<vmem>>, vector<32x32xf32>
    %cst_146 = arith.constant dense<0.000000e+00> : vector<32x32xf32>
    %236 = tpu.matmul %235, %234, %cst_146 {dimension_numbers = #tpu.dot_dimension_numbers<[1], [0], [0], [1], [0, 0, 1, 1], [], []>} : vector<32x32xf32>, vector<32x32xf32>, vector<32x32xf32> -> vector<32x32xf32>
    %c0_147 = arith.constant 0 : index
    %c3_148 = arith.constant 3 : index
    %c0_149 = arith.constant 0 : index
    %c0_150 = arith.constant 0 : index
    %237 = vector.load %arg7[%c0_147, %c3_148, %c0_149, %c0_150] : memref<1x4x32x32xf32, #tpu.memory_space<vmem>>, vector<1x1x32x32xf32>
    %238 = vector.shape_cast %237 : vector<1x1x32x32xf32> to vector<32x32xf32>
    %239 = vector.shape_cast %236 : vector<32x32xf32> to vector<1x1x32x32xf32>
    tpu.vector_store %arg7[%c0_147, %c3_148, %c0_149, %c0_150], %239 {strides = array<i32>} : memref<1x4x32x32xf32, #tpu.memory_space<vmem>>, vector<1x1x32x32xf32>,
    return
  }
  func.func @transform_0(%arg0: i32, %arg1: i32) -> (i32, i32, i32, i32) {
    %c0_i32 = arith.constant 0 : i32
    %c0_i32_0 = arith.constant 0 : i32
    %c0_i32_1 = arith.constant 0 : i32
    return %arg0, %c0_i32, %arg1, %c0_i32_0 : i32, i32, i32, i32
  }
  func.func @transform_1(%arg0: i32, %arg1: i32) -> (i32, i32, i32) {
    %c0_i32 = arith.constant 0 : i32
    %c0_i32_0 = arith.constant 0 : i32
    %c0_i32_1 = arith.constant 0 : i32
    %c0_i32_2 = arith.constant 0 : i32
    return %c0_i32, %c0_i32_0, %c0_i32_1 : i32, i32, i32
  }
  func.func @transform_2(%arg0: i32, %arg1: i32) -> (i32, i32, i32) {
    %c0_i32 = arith.constant 0 : i32
    %c0_i32_0 = arith.constant 0 : i32
    %c0_i32_1 = arith.constant 0 : i32
    %c0_i32_2 = arith.constant 0 : i32
    return %c0_i32, %c0_i32_0, %c0_i32_1 : i32, i32, i32
  }
  func.func @transform_3(%arg0: i32, %arg1: i32) -> (i32, i32) {
    %c0_i32 = arith.constant 0 : i32
    %c0_i32_0 = arith.constant 0 : i32
    %c0_i32_1 = arith.constant 0 : i32
    return %c0_i32, %c0_i32_0 : i32, i32
  }
  func.func @transform_4(%arg0: i32, %arg1: i32) -> (i32, i32) {
    %c0_i32 = arith.constant 0 : i32
    %c0_i32_0 = arith.constant 0 : i32
    %c0_i32_1 = arith.constant 0 : i32
    return %c0_i32, %c0_i32_0 : i32, i32
  }
  func.func @transform_5(%arg0: i32, %arg1: i32) -> (i32, i32, i32, i32) {
    %c0_i32 = arith.constant 0 : i32
    %c0_i32_0 = arith.constant 0 : i32
    %c0_i32_1 = arith.constant 0 : i32
    return %arg0, %c0_i32, %arg1, %c0_i32_0 : i32, i32, i32, i32
  }
}

</mosaic_0001>

<bundles_post_ra>
// kernel: pixel_shuffle_upsample.1
= control target key start
LH: loop header
LB: loop body
LE: loop exit
PB: predicated region body
PF: predicated region fallthrough
CT: control target
= control target key end

     0   :  { %10 = vsyncpa [#allocation3], 0  ;;  %s1807_s0 = inlined_call_operand.vmem [shape: f32[2,4,16,16], index: 0, kind: input, shape index: {}]   ;;  %s1808_s1 = inlined_call_operand.vmem [shape: f32[32,1,32], index: 1, kind: input, shape index: {}]   ;;  %s1809_s2 = inlined_call_operand.vmem [shape: f32[8,1,32], index: 2, kind: input, shape index: {}]   ;;  %s1810_s3 = inlined_call_operand.vmem [shape: f32[16,32], index: 3, kind: input, shape index: {}]   ;;  %s1811_s4 = inlined_call_operand.vmem [shape: f32[32,32], index: 4, kind: input, shape index: {}]   ;;  %s1812_s5 = inlined_call_operand.hbm [shape: f32[2,4,32,32], index: 5, kind: output, shape index: {}]  }
   0x1   :  { %12 = vsyncpa [#allocation3 + $0x1], 0  ;;  %s1327_s18 = smov 0   ;;  %s1329_s19 = smov 0  }
   0x2   :  { %s1331_s20 = smov 0   ;;  %s1333_s21 = smov 0  }
   0x3   :  { %s1335_s22 = smov 0   ;;  %s1337_s23 = smov 0  }
   0x4 LB: > { %s1023_s24 = sadd.s32 4294967295, %s1293_s23   ;;  %s1024_s25 = sadd.s32 4294967294, %s1293_s23   ;;  %s1293_s23 = sphi %s1337_s23, %s18_s23   ;;  %s1289_s22 = sphi %s1335_s22, %s1819_s22   ;;  %s1285_s21 = sphi %s1333_s21, %s1818_s21   ;;  %s1281_s20 = sphi %s1331_s20, %s1817_s20   ;;  %s1277_s19 = sphi %s1329_s19, %s1816_s19   ;;  %s1273_s18 = sphi %s1327_s18, %s1815_s18  }
   0x5   : > { %s30_s26 = sadd.s32 1, %s1289_s22  ;;  %s151_s27 = sadd.s32 1, %s1281_s20 }
   0x6   : > { %p32_p0 = scmp.ge.s32.totalorder %s30_s26, 2  ;;  %p161_p1 = scmp.ne.s32.totalorder %s1281_s20, %s1277_s19 }
   0x7   : > { %p162_p2 = scmp.eq.s32.totalorder %s1023_s24, 1  ;;  %p167_p3 = scmp.ne.s32.totalorder %s1277_s19, %s1273_s18 }
   0x8   : > { %s1821_s26 = smov (%p32_p0, %s30_s26), 0  ;;  %p168_p5 = scmp.eq.s32.totalorder %s1024_s25, 1 }
   0x9   : > { %p1367_p4 = por %p162_p2, %p161_p1  ;;  %s146_s29 = ssub.s32 %s1289_s22, %s1821_s26 }
   0xa   : > { %p1027_p6 = scmp.ge.s32.totalorder %s1293_s23, 1  ;;  %p149_p7 = scmp.eq.s32.totalorder %s146_s29, 0 }
   0xb   : > { %p1374_p8 = por %p168_p5, %p167_p3  ;;  %p211_p9 = scmp.lt.s32.totalorder %s1293_s23, 3 }
   0xc   : > { %s1380_s6 = scalar_select %p149_p7, %s1281_s20, %s151_s27  }
   0xd   : > { %p212_p10 = pnand %p1027_p6, %p211_p9 }
   0xe   : > { %p244_p11 = scmp.lt.s32.totalorder (!%p212_p10), %s1285_s21, 1  ;;  %s240_s14 = sand.u32 (!%p212_p10), 1, %s1277_s19  }
   0xf   : > { %215 = sbr.rel (%p212_p10) target bundleno = 357 (0x165), region = 40  ;;  %s1117_s17 = sshll.u32 (!%p212_p10), %s1285_s21, 7 }
  0x10   : > { %s940_s27 = scalar_lea.hbm (!%p212_p10), %s1812_s5, %s1117_s17 }
  0x11   : > { %s943_s7 = sshll.u32 (!%p212_p10), %s940_s27, 4  ;;  %s944_s7 = int_to_ptr.hbm [resolvable:$true] %s943_s7 }
  0x12   : > { %s1229_s8 = sshra.s32 (!%p212_p10), %s944_s7, 4  ;;  %s1230_s8 = int_to_ptr.hbm [resolvable:$true] %s1229_s8 }
  0x13   : > { %s1231_s9 = scalar_lea.hbm (!%p212_p10), %s1230_s8, 128  ;;  %p1236_p1 = scmp.lt.s32.totalorder (!%p212_p10), %s1230_s8, %s1812_s5 }
  0x14   : > { %v257_v0 = vld [vmem:[%s1810_s3 + $0x8] sm:$0xff]  ;;  %v256_v1 = vld [vmem:[%s1810_s3] sm:$0xff]  ;;  %s245_s11 = scalar_select %p244_p11, %s1285_s21, 1  ;;  %vm258_vm0 = vcmask 130048   ;;  %v1414_v12 = vld [vmem:[%s1808_s1 + $0x14] ss:$0 sm:$0xff] }
  0x15   : > { %343 = vmatpush.msra.mxu2 %v257_v0  ;;  %279 = vmatpush.msra.mxu0 %v257_v0  ;;  %v1404_v10 = vld [vmem:[%s1808_s1 + $0x4] ss:$0 sm:$0xff]  ;;  %v1409_v11 = vld [vmem:[%s1808_s1 + $0xc] ss:$0 sm:$0xff]  ;;  %v1419_v13 = vld [vmem:[%s1809_s2 + $0x1] ss:$0 sm:$0xff]  ;;  %p1232_p12 = scmp.ne.s32.totalorder %s1230_s8, %s1231_s9 }
  0x16   : > { %375 = vmatpush.msra.mxu3 %v257_v0  ;;  %311 = vmatpush.msra.mxu1 %v257_v0  ;;  %s1116_s12 = sshll.u32 %s245_s11, 6  ;;  %v1424_v14 = vld [vmem:[%s1808_s1 + $0x5] ss:$0 sm:$0xff]  ;;  %v1190_v15 = vld [vmem:[%s1808_s1 + $0x1c] ss:$0 sm:$0xff]  ;;  %vm472_vm1 = vcmask 261120  }
  0x17   : > { %344 = vmatpush.msra.mxu2 %v256_v1  ;;  %280 = vmatpush.msra.mxu0 %v256_v1  ;;  %s251_s15 = scalar_lea.vmem %s1807_s0, %s1116_s12  ;;  %v1432_v16 = vld [vmem:[%s1808_s1 + $0xd] ss:$0 sm:$0xff]  ;;  %v1437_v17 = vld [vmem:[%s1808_s1 + $0x15] ss:$0 sm:$0xff]  ;;  %v1442_v18 = vld [vmem:[%s1808_s1 + $0x1d] ss:$0 sm:$0xff]  ;;  %p1233_p13 = pnand %p1232_p12, %p1367_p4 }
  0x18   : > { %376 = vmatpush.msra.mxu3 %v256_v1  ;;  %312 = vmatpush.msra.mxu1 %v256_v1  ;;  %v1037_v2 = vld [vmem:[%s251_s15 + $0x20] sm:$0xff]  ;;  %v1041_v4 = vld [vmem:[%s251_s15 + $0x30] sm:$0xff]  ;;  %v1038_v6 = vld [vmem:[%s251_s15 + $0x28] sm:$0xff]  ;;  %s927_s21 = scalar_lea.sflag [#allocation3], %s240_s14  ;;  %s1235_s12 = scalar_lea.hbm %s1812_s5, 256 }
  0x19   : > { %v254_v3 = vld [vmem:[%s251_s15] sm:$0xff]  ;;  %1039 = vmatmul.msk.f32.vlgmr.msra.gmra.mxu2 %vm258_vm0, %v1037_v2  ;;  %v1033_v5 = vld [vmem:[%s251_s15 + $0x10] sm:$0xff]  ;;  %1043 = vmatmul.msk.f32.vlgmr.msra.gmra.mxu3 %vm258_vm0, %v1041_v4  ;;  %v255_v7 = vld [vmem:[%s251_s15 + $0x8] sm:$0xff]  ;;  %p1234_p0 = pneg %p1233_p13  ;;  %p1237_p2 = scmp.lt.s32.totalorder %s1235_s12, %s1231_s9 }
  0x1a   : > { %1031 = vmatmul.msk.f32.vlgmr.msra.gmra.mxu0 %vm258_vm0, %v254_v3  ;;  %1035 = vmatmul.msk.f32.vlgmr.msra.gmra.mxu1 %vm258_vm0, %v1033_v5  ;;  %v1042_v8 = vld [vmem:[%s251_s15 + $0x38] sm:$0xff]  ;;  %v1447_v19 = vld [vmem:[%s1809_s2 + $0x3] ss:$0 sm:$0xff]  ;;  %v1452_v20 = vld [vmem:[%s1809_s2 + $0x5] ss:$0 sm:$0xff] }
  0x1b   : > { %v1034_v9 = vld [vmem:[%s251_s15 + $0x18] sm:$0xff]  ;;  %v1457_v21 = vld [vmem:[%s1809_s2 + $0x7] ss:$0 sm:$0xff]  ;;  %v1464_v23 = vld [vmem:[%s1808_s1] ss:$0 sm:$0xff]  ;;  %s1028_s15 = sshll.u32 %s240_s14, 7  ;;  %p1238_p3 = por %p1237_p2, %p1236_p1 }
  0x1c   : > { %v1469_v24 = vld [vmem:[%s1808_s1 + $0x8] ss:$0 sm:$0xff]  ;;  %v1476_v26 = vld [vmem:[%s1808_s1 + $0x6] ss:$0 sm:$0xff]  ;;  %v1488_v31 = vld [vmem:[%s1808_s1 + $0x1] ss:$0 sm:$0xff] }
  0x1d   : > { %v1493_v32 = vld [vmem:[%s1808_s1 + $0x9] ss:$0 sm:$0xff]  ;;  %v1498_v33 = vld [vmem:[%s1808_s1 + $0xe] ss:$0 sm:$0xff]  ;;  %v1511_v38 = vld [vmem:[%s1809_s2] ss:$0 sm:$0xff]  ;;  %p1239_p5 = pnand %p1238_p3, %p1234_p0 }
  0x1e   : > { %v1516_v39 = vld [vmem:[%s1809_s2 + $0x2] ss:$0 sm:$0xff]  ;;  %v1188_v40 = vld [vmem:[%s1808_s1 + $0x16] ss:$0 sm:$0xff]  ;;  %v1528_v45 = vld [vmem:[%s1808_s1 + $0x10] ss:$0 sm:$0xff] }
  0x1f   : > { %v1533_v46 = vld [vmem:[%s1808_s1 + $0x11] ss:$0 sm:$0xff]  ;;  %v1179_v47 = vld [vmem:[%s1808_s1 + $0x7] ss:$0 sm:$0xff]  ;;  %v1184_v48 = vld [vmem:[%s1808_s1 + $0xf] ss:$0 sm:$0xff] }
  0x20   : > { %v1193_v49 = vld [vmem:[%s1808_s1 + $0x1e] ss:$0 sm:$0xff]  ;;  %v1189_v3 = vld [vmem:[%s1808_s1 + $0x17] ss:$0 sm:$0xff]  ;;  %v1194_v4 = vld [vmem:[%s1808_s1 + $0x1f] ss:$0 sm:$0xff] }
  0x21   : > { %1040 = vmatmul.msk.f32.gmra.mxu2 %vm258_vm0, %v1038_v6  ;;  %1044 = vmatmul.msk.f32.gmra.mxu3 %vm258_vm0, %v1042_v8  ;;  %s1734_s16 = scalar_lea.vmem [#allocation2], %s1028_s15 }
  0x22   : > { %1032 = vmatmul.msk.f32.gmra.mxu0 %vm258_vm0, %v255_v7  ;;  %1036 = vmatmul.msk.f32.gmra.mxu1 %vm258_vm0, %v1034_v9  ;;  %s941_s29 = sshll.u32 %s1734_s16, 4  ;;  %s942_s29 = int_to_ptr.vmem [resolvable:$true] %s941_s29 }
  0x97   : > { %v1459_v22 = vpop.f32.mrf.mxu0  ;;  %v1471_v25 = vpop.f32.mrf.mxu1 }
  0x98   : > { %v432_v27 = vmul.f32 %v1404_v10, %v1459_v22  ;;  %v568_v28 = vmul.f32 %v1409_v11, %v1459_v22  ;;  %v704_v29 = vmul.f32 %v1414_v12, %v1459_v22  ;;  %v840_v30 = vmul.f32 %v1190_v15, %v1459_v22 }
  0x99   : > { %v444_v34 = vmul.f32 %v1424_v14, %v1471_v25  ;;  %v580_v35 = vmul.f32 %v1432_v16, %v1471_v25  ;;  %v716_v36 = vmul.f32 %v1437_v17, %v1471_v25  ;;  %v852_v37 = vmul.f32 %v1442_v18, %v1471_v25 }
  0x9a   : > { %v437_v41 = vadd.f32 %v1419_v13, %v432_v27  ;;  %v573_v42 = vadd.f32 %v1447_v19, %v568_v28  ;;  %v709_v43 = vadd.f32 %v1452_v20, %v704_v29  ;;  %v845_v44 = vadd.f32 %v1457_v21, %v840_v30 }
  0x9b   : > { %v389_v50 = vmul.f32 %v1464_v23, %v1459_v22  ;;  %v525_v51 = vmul.f32 %v1469_v24, %v1459_v22  ;;  %v1550_v54 = vmul.f32 %v1488_v31, %v1471_v25  ;;  %v1554_v55 = vmul.f32 %v1493_v32, %v1471_v25 }
  0x9c   : > { %v446_v52 = vadd.f32 %v444_v34, %v437_v41  ;;  %v582_v53 = vadd.f32 %v580_v35, %v573_v42  ;;  %v1556_v56 = vpop.f32.mrf.mxu2  ;;  %v718_v57 = vadd.f32 %v716_v36, %v709_v43  ;;  %v854_v58 = vadd.f32 %v852_v37, %v845_v44  ;;  %v1564_v61 = vpop.f32.mrf.mxu3 }
  0x9d   : > { %v1559_v59 = vadd.f32 %v1511_v38, %v389_v50  ;;  %v1562_v60 = vadd.f32 %v1516_v39, %v525_v51  ;;  %v453_v62 = vmul.f32 %v1476_v26, %v1556_v56  ;;  %v589_v63 = vmul.f32 %v1498_v33, %v1556_v56 }
  0x9e   : > { %v1572_v0 = vmul.f32 %v1528_v45, %v1459_v22  ;;  %v1576_v1 = vmul.f32 %v1533_v46, %v1471_v25  ;;  %v462_v5 = vmul.f32 %v1179_v47, %v1564_v61  ;;  %v598_v6 = vmul.f32 %v1184_v48, %v1564_v61 }
  0x9f   : > { %v1578_v2 = vpop.f32.mrf.mxu0  ;;  %v725_v7 = vmul.f32 %v1188_v40, %v1556_v56  ;;  %v861_v8 = vmul.f32 %v1193_v49, %v1556_v56  ;;  %v1590_v9 = vpop.f32.mrf.mxu1  ;;  %v455_v41 = vadd.f32 %v453_v62, %v446_v52  ;;  %v591_v42 = vadd.f32 %v589_v63, %v582_v53 }
  0xa0   : > { %v433_v27 = vmul.f32 %v1404_v10, %v1578_v2  ;;  %v569_v28 = vmul.f32 %v1409_v11, %v1578_v2  ;;  %v705_v29 = vmul.f32 %v1414_v12, %v1578_v2  ;;  %v841_v30 = vmul.f32 %v1190_v15, %v1578_v2 }
  0xa1   : > { %v445_v34 = vmul.f32 %v1424_v14, %v1590_v9  ;;  %v581_v35 = vmul.f32 %v1432_v16, %v1590_v9  ;;  %v717_v36 = vmul.f32 %v1437_v17, %v1590_v9  ;;  %v853_v10 = vmul.f32 %v1442_v18, %v1590_v9 }
  0xa2   : > { %v438_v37 = vadd.f32 %v1419_v13, %v433_v27  ;;  %v574_v11 = vadd.f32 %v1447_v19, %v569_v28  ;;  %v710_v12 = vadd.f32 %v1452_v20, %v705_v29  ;;  %v846_v15 = vadd.f32 %v1457_v21, %v841_v30 }
  0xa3   : > { %v734_v14 = vmul.f32 %v1189_v3, %v1564_v61  ;;  %v870_v16 = vmul.f32 %v1194_v4, %v1564_v61  ;;  %v464_v18 = vadd.f32 %v462_v5, %v455_v41  ;;  %v600_v13 = vadd.f32 %v598_v6, %v591_v42  ;;  %v1204_v42 = vld [vmem:[%s1808_s1 + $0xb] ss:$0 sm:$0xff] }
  0xa4   : > { %v447_v43 = vadd.f32 %v445_v34, %v438_v37  ;;  %v583_v44 = vadd.f32 %v581_v35, %v574_v11  ;;  %v719_v17 = vadd.f32 %v717_v36, %v710_v12  ;;  %v855_v50 = vadd.f32 %v853_v10, %v846_v15  ;;  %v1613_v51 = vpop.f32.mrf.mxu2  ;;  %v1615_v28 = vpop.f32.mrf.mxu3  ;;  %v1203_v37 = vld [vmem:[%s1808_s1 + $0xa] ss:$0 sm:$0xff] }
  0xa5   : > { %v727_v27 = vadd.f32 %v725_v7, %v718_v57  ;;  %v863_v19 = vadd.f32 %v861_v8, %v854_v58  ;;  %v454_v20 = vmul.f32 %v1476_v26, %v1613_v51  ;;  %v590_v21 = vmul.f32 %v1498_v33, %v1613_v51 }
  0xa6   : > { %v726_v52 = vmul.f32 %v1188_v40, %v1613_v51  ;;  %v862_v53 = vmul.f32 %v1193_v49, %v1613_v51  ;;  %v463_v62 = vmul.f32 %v1179_v47, %v1615_v28  ;;  %v599_v63 = vmul.f32 %v1184_v48, %v1615_v28  ;;  %v1198_v40 = vld [vmem:[%s1808_s1 + $0x2] ss:$0 sm:$0xff]  ;;  %v1199_v47 = vld [vmem:[%s1808_s1 + $0x3] ss:$0 sm:$0xff] }
  0xa7   : > { %v735_v5 = vmul.f32 %v1189_v3, %v1615_v28  ;;  %v871_v57 = vmul.f32 %v1194_v4, %v1615_v28  ;;  %v456_v58 = vadd.f32 %v454_v20, %v447_v43  ;;  %v592_v6 = vadd.f32 %v590_v21, %v583_v44  ;;  %v1208_v43 = vld [vmem:[%s1808_s1 + $0x12] ss:$0 sm:$0xff]  ;;  %v1210_v44 = vld [vmem:[%s1808_s1 + $0x18] ss:$0 sm:$0xff] }
  0xa8   : > { %v728_v7 = vadd.f32 %v726_v52, %v719_v17  ;;  %v864_v8 = vadd.f32 %v862_v53, %v855_v50  ;;  %v466_v26 = vmax.f32 %v464_v18, 0.0  ;;  %v602_v29 = vmax.f32 %v600_v13, 0.0  ;;  %v1209_v18 = vld [vmem:[%s1808_s1 + $0x13] ss:$0 sm:$0xff]  ;;  %v1211_v53 = vld [vmem:[%s1809_s2 + $0x6] ss:$0 sm:$0xff] }
  0xa9   : > { %v736_v30 = vadd.f32 %v734_v14, %v727_v27  ;;  %v872_v33 = vadd.f32 %v870_v16, %v863_v19  ;;  %v465_v48 = vadd.f32 %v463_v62, %v456_v58  ;;  %v601_v49 = vadd.f32 %v599_v63, %v592_v6  ;;  %v1214_v62 = vld [vmem:[%s1808_s1 + $0x1b] ss:$0 sm:$0xff] }
  0xaa   : > { %v737_v3 = vadd.f32 %v735_v5, %v728_v7  ;;  %v873_v4 = vadd.f32 %v871_v57, %v864_v8  ;;  %v390_v34 = vmul.f32 %v1464_v23, %v1578_v2  ;;  %v402_v35 = vmul.f32 %v1488_v31, %v1590_v9 }
  0xab   : > { %v411_v36 = vmul.f32 %v1198_v40, %v1613_v51  ;;  %v420_v10 = vmul.f32 %v1199_v47, %v1615_v28  ;;  %v467_v11 = vmax.f32 %v465_v48, 0.0  ;;  %v603_v12 = vmax.f32 %v601_v49, 0.0 }
  0xac   : > { %v739_v15 = vmax.f32 %v737_v3, 0.0  ;;  %v875_v41 = vmax.f32 %v873_v4, 0.0  ;;  %v395_v23 = vadd.f32 %v1511_v38, %v390_v34  ;;  %v526_v31 = vmul.f32 %v1469_v24, %v1578_v2 }
  0xad   : > { %v538_v14 = vmul.f32 %v1493_v32, %v1590_v9  ;;  %v547_v16 = vmul.f32 %v1203_v37, %v1613_v51  ;;  %497 = vmatpush.msrb.mxu0 %v467_v11  ;;  %632 = vmatpush.msrb.mxu1 %v603_v12  ;;  %v738_v17 = vmax.f32 %v736_v30, 0.0  ;;  %v556_v38 = vmul.f32 %v1204_v42, %v1615_v28  ;;  %v1206_v32 = vld [vmem:[%s1809_s2 + $0x4] ss:$0 sm:$0xff] }
  0xae   : > { %v662_v24 = vmul.f32 %v1528_v45, %v1578_v2  ;;  %v674_v50 = vmul.f32 %v1533_v46, %v1590_v9  ;;  %768 = vmatpush.msrb.mxu2 %v739_v15  ;;  %904 = vmatpush.msrb.mxu3 %v875_v41  ;;  %v874_v13 = vmax.f32 %v872_v33, 0.0  ;;  %v404_v27 = vadd.f32 %v402_v35, %v395_v23  ;;  %v1212_v45 = vld [vmem:[%s1808_s1 + $0x19] ss:$0 sm:$0xff] }
  0xaf   : > { %v531_v19 = vadd.f32 %v1516_v39, %v526_v31  ;;  %v683_v20 = vmul.f32 %v1208_v43, %v1613_v51  ;;  %498 = vmatpush.msrb.mxu0 %v466_v26  ;;  %633 = vmatpush.msrb.mxu1 %v602_v29  ;;  %v692_v46 = vmul.f32 %v1209_v18, %v1615_v28  ;;  %v1213_v39 = vld [vmem:[%s1808_s1 + $0x1a] ss:$0 sm:$0xff] }
  0xb0   : > { %v667_v21 = vadd.f32 %v1206_v32, %v662_v24  ;;  %v798_v52 = vmul.f32 %v1210_v44, %v1578_v2  ;;  %769 = vmatpush.msrb.mxu2 %v738_v17  ;;  %905 = vmatpush.msrb.mxu3 %v874_v13  ;;  %v413_v63 = vadd.f32 %v411_v36, %v404_v27  ;;  %v741_v24 = vld [vmem:[%s1811_s4 + $0x8] sm:$0xff] }
  0xb1   : > { %v540_v5 = vadd.f32 %v538_v14, %v531_v19  ;;  %v810_v57 = vmul.f32 %v1212_v45, %v1590_v9  ;;  %v819_v6 = vmul.f32 %v1213_v39, %v1613_v51  ;;  %v828_v7 = vmul.f32 %v1214_v62, %v1615_v28 }
  0xb2   : > { %v676_v58 = vadd.f32 %v674_v50, %v667_v21  ;;  %v803_v2 = vadd.f32 %v1211_v53, %v798_v52  ;;  %v422_v8 = vadd.f32 %v420_v10, %v413_v63  ;;  %v403_v29 = vadd.f32 %v1550_v54, %v1559_v59 }
  0xb3   : > { %v549_v26 = vadd.f32 %v547_v16, %v540_v5  ;;  %v410_v30 = vmul.f32 %v1198_v40, %v1556_v56  ;;  %v419_v49 = vmul.f32 %v1199_v47, %v1564_v61  ;;  %v539_v9 = vadd.f32 %v1554_v55, %v1562_v60 }
  0xb4   : > { %v685_v33 = vadd.f32 %v683_v20, %v676_v58  ;;  %v812_v48 = vadd.f32 %v810_v57, %v803_v2  ;;  %v424_v3 = vmax.f32 %v422_v8, 0.0  ;;  %v546_v51 = vmul.f32 %v1203_v37, %v1556_v56 }
  0xb5   : > { %v558_v4 = vadd.f32 %v556_v38, %v549_v26  ;;  %v412_v34 = vadd.f32 %v410_v30, %v403_v29  ;;  %v555_v36 = vmul.f32 %v1204_v42, %v1564_v61  ;;  %v666_v54 = vadd.f32 %v1206_v32, %v1572_v0  ;;  %v743_v32 = vld [vmem:[%s1811_s4 + $0x18] sm:$0xff] }
  0xb6   : > { %v694_v28 = vadd.f32 %v692_v46, %v685_v33  ;;  %v821_v35 = vadd.f32 %v819_v6, %v812_v48  ;;  %499 = vmatpush.msrb.mxu0 %v424_v3  ;;  %v548_v10 = vadd.f32 %v546_v51, %v539_v9  ;;  %v682_v47 = vmul.f32 %v1208_v43, %v1556_v56 }
  0xb7   : > { %v560_v59 = vmax.f32 %v558_v4, 0.0  ;;  %v421_v40 = vadd.f32 %v419_v49, %v412_v34  ;;  %v675_v55 = vadd.f32 %v1576_v1, %v666_v54  ;;  %v691_v60 = vmul.f32 %v1209_v18, %v1564_v61  ;;  %v740_v1 = vld [vmem:[%s1811_s4] sm:$0xff] }
  0xb8   : > { %v696_v11 = vmax.f32 %v694_v28, 0.0  ;;  %v830_v12 = vadd.f32 %v828_v7, %v821_v35  ;;  %v557_v15 = vadd.f32 %v555_v36, %v548_v10  ;;  %v797_v41 = vmul.f32 %v1210_v44, %v1459_v22 }
  0xb9   : > { %634 = vmatpush.msrb.mxu1 %v560_v59  ;;  %v423_v37 = vmax.f32 %v421_v40, 0.0  ;;  %v809_v42 = vmul.f32 %v1212_v45, %v1471_v25  ;;  %v684_v23 = vadd.f32 %v682_v47, %v675_v55  ;;  %v818_v16 = vmul.f32 %v1213_v39, %v1556_v56 }
  0xba   : > { %770 = vmatpush.msrb.mxu2 %v696_v11  ;;  %v832_v0 = vmax.f32 %v830_v12, 0.0  ;;  %v559_v31 = vmax.f32 %v557_v15, 0.0  ;;  %v802_v14 = vadd.f32 %v1211_v53, %v797_v41  ;;  %v827_v25 = vmul.f32 %v1214_v62, %v1564_v61  ;;  %v742_v61 = vld [vmem:[%s1811_s4 + $0x10] sm:$0xff] }
  0xbb   : > { %500 = vmatpush.msrb.mxu0 %v423_v37  ;;  %v693_v43 = vadd.f32 %v691_v60, %v684_v23 }
  0xbc   : > { %906 = vmatpush.msrb.mxu3 %v832_v0  ;;  %1053 = vmatmul.msk.f32.vlgmr.msrb.gmra.mxu0 %vm472_vm1, %v740_v1  ;;  %v811_v22 = vadd.f32 %v809_v42, %v802_v14 }
  0xbd   : > { %635 = vmatpush.msrb.mxu1 %v559_v31  ;;  %v695_v44 = vmax.f32 %v693_v43, 0.0 }
  0xbe   : > { %1067 = vmatmul.msk.f32.vlgmr.msrb.gmra.mxu1 %vm472_vm1, %v740_v1  ;;  %v820_v17 = vadd.f32 %v818_v16, %v811_v22 }
  0xbf   : > { %771 = vmatpush.msrb.mxu2 %v695_v44 }
  0xc0   : > { %v829_v38 = vadd.f32 %v827_v25, %v820_v17  ;;  %1085 = vmatmul.msk.f32.vlgmr.msrb.gmra.mxu2 %vm472_vm1, %v740_v1 }
  0xc2   : > { %v831_v56 = vmax.f32 %v829_v38, 0.0 }
  0xc4   : > { %1054 = vmatmul.msk.f32.gmra.mxu0 %vm472_vm1, %v741_v24  ;;  %907 = vmatpush.msrb.mxu3 %v831_v56 }
  0xc5   : > { %1103 = vmatmul.msk.f32.vlgmr.msrb.gmra.mxu3 %vm472_vm1, %v740_v1 }
  0xc6   : > { %1068 = vmatmul.msk.f32.gmra.mxu1 %vm472_vm1, %v741_v24 }
  0xc8   : > { %1086 = vmatmul.msk.f32.gmra.mxu2 %vm472_vm1, %v741_v24 }
  0xcc   : > { %1055 = vmatmul.msk.f32.gmra.mxu0 %vm472_vm1, %v742_v61 }
  0xcd   : > { %1104 = vmatmul.msk.f32.gmra.mxu3 %vm472_vm1, %v741_v24 }
  0xce   : > { %1069 = vmatmul.msk.f32.gmra.mxu1 %vm472_vm1, %v742_v61 }
  0xd0   : > { %1087 = vmatmul.msk.f32.gmra.mxu2 %vm472_vm1, %v742_v61 }
  0xd4   : > { %1056 = vmatmul.msk.f32.gmra.mxu0 %vm472_vm1, %v743_v32 }
  0xd5   : > { %1105 = vmatmul.msk.f32.gmra.mxu3 %vm472_vm1, %v742_v61 }
  0xd6   : > { %1070 = vmatmul.msk.f32.gmra.mxu1 %vm472_vm1, %v743_v32 }
  0xd8   : > { %1088 = vmatmul.msk.f32.gmra.mxu2 %vm472_vm1, %v743_v32 }
  0xdd   : > { %1106 = vmatmul.msk.f32.gmra.mxu3 %vm472_vm1, %v743_v32 }
 0x139   : > { %v502_v50 = vpop.f32.mrf.mxu0 }
 0x13a   : > { %514 = vst.msk [vmem:[%s1734_s16] sm:$0xff] %vm472_vm1, %v502_v50 }
 0x13b   : > { %v637_v18 = vpop.f32.mrf.mxu1 }
 0x13c   : > { %1071 = vst.msk [vmem:[%s1734_s16 + $0x20] sm:$0xff] %vm472_vm1, %v637_v18 }
 0x141   : > { %v505_v13 = vpop.f32.mrf.mxu0 }
 0x142   : > { %515 = vst.msk [vmem:[%s1734_s16 + $0x8] sm:$0xff] %vm472_vm1, %v505_v13 }
 0x143   : > { %v640_v27 = vpop.f32.mrf.mxu1  ;;  %v773_v19 = vpop.f32.mrf.mxu2 }
 0x144   : > { %1072 = vst.msk [vmem:[%s1734_s16 + $0x28] sm:$0xff] %vm472_vm1, %v640_v27 }
 0x145   : > { %1089 = vst.msk [vmem:[%s1734_s16 + $0x40] sm:$0xff] %vm472_vm1, %v773_v19 }
 0x148   : > { %v909_v20 = vpop.f32.mrf.mxu3 }
 0x149   : > { %v508_v45 = vpop.f32.mrf.mxu0  ;;  %1107 = vst.msk [vmem:[%s1734_s16 + $0x60] sm:$0xff] %vm472_vm1, %v909_v20 }
 0x14a   : > { %516 = vst.msk [vmem:[%s1734_s16 + $0x10] sm:$0xff] %vm472_vm1, %v508_v45 }
 0x14b   : > { %v643_v21 = vpop.f32.mrf.mxu1  ;;  %v776_v46 = vpop.f32.mrf.mxu2 }
 0x14c   : > { %1073 = vst.msk [vmem:[%s1734_s16 + $0x30] sm:$0xff] %vm472_vm1, %v643_v21 }
 0x14d   : > { %1090 = vst.msk [vmem:[%s1734_s16 + $0x48] sm:$0xff] %vm472_vm1, %v776_v46 }
 0x150   : > { %v912_v52 = vpop.f32.mrf.mxu3 }
 0x151   : > { %v511_v53 = vpop.f32.mrf.mxu0  ;;  %1108 = vst.msk [vmem:[%s1734_s16 + $0x68] sm:$0xff] %vm472_vm1, %v912_v52 }
 0x152   : > { %517 = vst.msk [vmem:[%s1734_s16 + $0x18] sm:$0xff] %vm472_vm1, %v511_v53 }
 0x153   : > { %v646_v39 = vpop.f32.mrf.mxu1  ;;  %v779_v62 = vpop.f32.mrf.mxu2 }
 0x154   : > { %1074 = vst.msk [vmem:[%s1734_s16 + $0x38] sm:$0xff] %vm472_vm1, %v646_v39 }
 0x155   : > { %1091 = vst.msk [vmem:[%s1734_s16 + $0x50] sm:$0xff] %vm472_vm1, %v779_v62 }
 0x158   : > { %v915_v63 = vpop.f32.mrf.mxu3 }
 0x159   : > { %1109 = vst.msk [vmem:[%s1734_s16 + $0x70] sm:$0xff] %vm472_vm1, %v915_v63 }
 0x15b   : > { %v782_v5 = vpop.f32.mrf.mxu2 }
 0x15c   : > { %1092 = vst.msk [vmem:[%s1734_s16 + $0x58] sm:$0xff] %vm472_vm1, %v782_v5 }
 0x160   : > { %v918_v57 = vpop.f32.mrf.mxu3 }
 0x161   : > { %1110 = vst.msk [vmem:[%s1734_s16 + $0x78] sm:$0xff] %vm472_vm1, %v918_v57 }
 0x162   : > { %1242 = shalt.err (!%p1239_p5)
}
 0x163   : > { %s1295_s14 = smov 128   ;;  %s1296_s16 = smov 8  }
 0x164   : > { %1118 = dma.vmem_to_hbm [thread:$0]  (%p1367_p4), %s942_s29, 2048, %s944_s7, %s927_s21, %s1295_s14, %s1295_s14, %s1296_s16  }
 0x165 PF: > { %p1124_p6 = scmp.ge.s32.totalorder %s1293_s23, 2  ;;  %s958_s17 = sand.u32 1, %s1273_s18  }
 0x166   : > { %s959_s24 = scalar_lea.sflag [#allocation3], %s958_s17 }
 0x167   : > { %p1121_p7 = pnand %p1124_p6, %p1374_p8 }
 0x169   : > { %p1122_p9 = pneg %p1121_p7 }
 0x16b   : > { %1268 = dma.done.wait (%p1122_p9), %s959_s24, 2048  }
 0x16c   : > { %1270 = vsyncadd (%p1122_p9), %s959_s24, 4294965248  ;;  %s18_s23 = sadd.s32 1, %s1293_s23   ;;  %s1815_s18 = smov %s1277_s19 }
 0x16d   : > { %p15_p10 = scmp.ge.s32.totalorder %s18_s23, 4   ;;  %s1816_s19 = smov %s1281_s20 }
 0x16e   : > { %s1817_s20 = smov %s1380_s6  ;;  %s1818_s21 = smov %s1289_s22 }
 0x16f   : > { %s1819_s22 = smov %s1821_s26  ;;  %17 = sbr.rel (!%p15_p10) target bundleno = 4 (0x4), region = 119 }
 0x174   :  { %965 = vsyncpa [#allocation3], 1 }
 0x175   :  { %967 = vsyncpa [#allocation3 + $0x1], 1 }

</bundles_post_ra>
